<compile_context>
chip_gen: v7x
topology: tpu7x:2x2x1
jax: 0.10.0
libtpu: 0.0.40
codegen_flags: <defaults>
</compile_context>

<pallas_src>
import jax
import jax.numpy as jnp
from jax.experimental import pallas as pl
from jax.experimental.pallas import tpu as pltpu


def _round_up(x, m):
    return (x + m - 1) // m * m


def _gather_onehot_kernel(idx_ref, table_ref, out_ref):
    # idx_ref:   (TB, 1) int32 in VMEM
    # table_ref: (num_rel, K) full table, VMEM-resident across all grid steps
    # out_ref:   (TB, K)
    idx = idx_ref[...]                                   # (TB, 1)
    tb = idx.shape[0]
    num_rel = table_ref.shape[0]
    rel_ids = jax.lax.broadcasted_iota(jnp.int32, (tb, num_rel), 1)
    one_hot = (rel_ids == idx).astype(table_ref.dtype)   # (TB, num_rel)
    out_ref[...] = jnp.dot(
        one_hot, table_ref[...], preferred_element_type=jnp.float32
    ).astype(out_ref.dtype)


def rel_attention_forward(rel_attention, batch_relation):
    """Pallas equivalent of `rel_attention[batch_relation, :]`.

    rel_attention:  (num_rel, K) float array
    batch_relation: int array of any shape; returns batch_relation.shape + (K,)
    """
    num_rel, K = rel_attention.shape
    idx_shape = batch_relation.shape
    idx_flat = jnp.reshape(batch_relation, (-1,)).astype(jnp.int32)
    B = int(idx_flat.shape[0])

    # Clamp indices: PyTorch would raise IndexError on OOB; here we clamp so
    # no index can ever reference outside the table (no chip-fault risk).
    idx_flat = jnp.clip(idx_flat, 0, num_rel - 1)

    # Batch tile: sublane-dense (multiple of 8), capped at 128 rows per step.
    TB = min(128, _round_up(max(B, 1), 8))
    B_pad = _round_up(max(B, 1), TB)
    if B_pad != B:
        idx_flat = jnp.pad(idx_flat, (0, B_pad - B))     # pad rows gather row 0
    idx_2d = idx_flat.reshape(B_pad, 1)
    grid = (B_pad // TB,)

    # Explicit VMEM budget: table (revisited, ~single-buffered) + double-
    # buffered idx/out tiles + slack. Well under the scoped default on every
    # generation for realistic num_rel*K; raise further if the table grows.
    itemsize = jnp.dtype(rel_attention.dtype).itemsize
    table_bytes = num_rel * K * itemsize
    block_bytes = 2 * (TB * K * itemsize + TB * 4)
    vmem_limit = min(max(2 * table_bytes + block_bytes + (1 << 20), 16 << 20),
                     64 << 20)

    out_flat = pl.pallas_call(
        _gather_onehot_kernel,
        out_shape=jax.ShapeDtypeStruct((B_pad, K), rel_attention.dtype),
        grid_spec=pltpu.PrefetchScalarGridSpec(
            num_scalar_prefetch=0,
            grid=grid,
            in_specs=[
                # (TB, 1) index tile; last dim equals full array dim -> legal.
                pl.BlockSpec((TB, 1), lambda i: (i, 0)),
                # Full table, same block every step -> stays resident in VMEM.
                pl.BlockSpec((num_rel, K), lambda i: (0, 0)),
            ],
            out_specs=pl.BlockSpec((TB, K), lambda i: (i, 0)),
        ),
        compiler_params=pltpu.CompilerParams(
            dimension_semantics=("parallel",),   # batch tiles independent; v7x 2-TC split
            vmem_limit_bytes=vmem_limit,
        ),
    )(idx_2d, rel_attention)

    if B_pad != B:
        out_flat = out_flat[:B]
    return jnp.reshape(out_flat, idx_shape + (K,))


def init_rel_attention(key, num_rel, K, gain=1.414, dtype=jnp.float32):
    # torch.nn.init.xavier_normal_: std = gain * sqrt(2 / (fan_in + fan_out))
    std = gain * (2.0 / (num_rel + K)) ** 0.5
    return (jax.random.normal(key, (num_rel, K)) * std).astype(dtype)


if __name__ == "__main__":
    key = jax.random.PRNGKey(0)
    k_param, k_idx = jax.random.split(key)

    num_rel = 16     # number of relations
    K = 128          # attention dim (lane-dense)
    B = 8            # batch of relation ids

    rel_attention = init_rel_attention(k_param, num_rel, K)
    batch_relation = jax.random.randint(k_idx, (B,), 0, num_rel, dtype=jnp.int32)

    out = rel_attention_forward(rel_attention, batch_relation)
    out = jax.block_until_ready(out)

    # Reference check against plain JAX gather.
    ref = rel_attention[batch_relation, :]
    assert out.shape == (B, K)
    assert jnp.allclose(out, ref), "Pallas gather mismatch vs reference"

    print("KERNEL_OK")
</pallas_src>

<mosaic_0001>
module attributes {stable_mosaic.version = 11 : i64} {
  func.func @_gather_onehot_kernel(%arg0: i32, %arg1: memref<8x1xi32, #tpu.memory_space<vmem>>, %arg2: memref<16x128xf32, #tpu.memory_space<vmem>>, %arg3: memref<8x128xf32, #tpu.memory_space<vmem>>) attributes {dimension_semantics = [#tpu.dimension_semantics<parallel>], iteration_bounds = array<i64: 1>, scalar_prefetch = 0 : i64, scratch_operands = 0 : i64, tpu.core_type = #tpu.core_type<tc>, window_params = [{transform_indices = @transform_0, window_bounds = array<i64: 8, 1>}, {pipeline_mode = #tpu.pipeline_mode<synchronous>, transform_indices = @transform_1, window_bounds = array<i64: 16, 128>}, {transform_indices = @transform_2, window_bounds = array<i64: 8, 128>}]} {
    %c0 = arith.constant 0 : index
    %c0_0 = arith.constant 0 : index
    %0 = vector.load %arg1[%c0, %c0_0] : memref<8x1xi32, #tpu.memory_space<vmem>>, vector<8x1xi32>
    %1 = tpu.iota {dimensions = array<i32: 1>} : vector<8x16xi32>
    %2 = vector.broadcast %0 : vector<8x1xi32> to vector<8x16xi32>
    %3 = arith.cmpi eq, %1, %2 : vector<8x16xi32>
    %4 = arith.extui %3 : vector<8x16xi1> to vector<8x16xi32>
    %5 = arith.sitofp %4 : vector<8x16xi32> to vector<8x16xf32>
    %c0_1 = arith.constant 0 : index
    %c0_2 = arith.constant 0 : index
    %6 = vector.load %arg2[%c0_1, %c0_2] : memref<16x128xf32, #tpu.memory_space<vmem>>, vector<16x128xf32>
    %cst = arith.constant dense<0.000000e+00> : vector<8x128xf32>
    %7 = tpu.matmul %5, %6, %cst {dimension_numbers = #tpu.dot_dimension_numbers<[1], [0], [0], [1], [0, 0, 1, 1], [], []>} : vector<8x16xf32>, vector<16x128xf32>, vector<8x128xf32> -> vector<8x128xf32>
    %c0_3 = arith.constant 0 : index
    %c0_4 = arith.constant 0 : index
    %8 = vector.load %arg3[%c0_3, %c0_4] : memref<8x128xf32, #tpu.memory_space<vmem>>, vector<8x128xf32>
    tpu.vector_store %arg3[%c0_3, %c0_4], %7 {strides = array<i32>} : memref<8x128xf32, #tpu.memory_space<vmem>>, vector<8x128xf32>,
    return
  }
  func.func @transform_0(%arg0: i32) -> (i32, i32) {
    %c0_i32 = arith.constant 0 : i32
    %c0_i32_0 = arith.constant 0 : i32
    return %arg0, %c0_i32 : i32, i32
  }
  func.func @transform_1(%arg0: i32) -> (i32, i32) {
    %c0_i32 = arith.constant 0 : i32
    %c0_i32_0 = arith.constant 0 : i32
    %c0_i32_1 = arith.constant 0 : i32
    return %c0_i32, %c0_i32_0 : i32, i32
  }
  func.func @transform_2(%arg0: i32) -> (i32, i32) {
    %c0_i32 = arith.constant 0 : i32
    %c0_i32_0 = arith.constant 0 : i32
    return %arg0, %c0_i32 : i32, i32
  }
}

</mosaic_0001>

<bundles_post_ra>
// kernel: tpu_custom_call.1
= control target key start
LH: loop header
LB: loop body
LE: loop exit
PB: predicated region body
PF: predicated region fallthrough
CT: control target
= control target key end

     0   :  { %7 = vsyncpa [#allocation3], 0  ;;  %s249_s0 = inlined_call_operand.vmem [shape: s32[8,1], index: 0, kind: input, shape index: {}]   ;;  %s250_s1 = inlined_call_operand.hbm [shape: f32[16,128], index: 1, kind: input, shape index: {}]   ;;  %s251_s2 = inlined_call_operand.hbm [shape: f32[8,128], index: 2, kind: output, shape index: {}]  }
   0x1   :  { %8 = vsyncpa [#allocation4], 0  ;;  %s199_s9 = smov [#allocation2]   ;;  %s151_s13 = scalar_lea.hbm %s250_s1, 256 }
   0x2   :  { %s16_s10 = sshll.u32 %s199_s9, 4  ;;  %p152_p0 = scmp.ne.s32.totalorder %s250_s1, %s151_s13  ;;  %s17_s10 = int_to_ptr.vmem [resolvable:$true] %s16_s10 }
   0x3   :  { %p155_p1 = scmp.lt.u32.totalorder %s151_s13, %s250_s1 }
   0x5   :  { %p157_p2 = pnand %p155_p1, %p152_p0 }
   0x7   :  { %160 = shalt.err (!%p157_p2)
}
   0x8   :  { %s161_s18 = scalar_lea.vmem %s17_s10, 256  ;;  %p166_p4 = scmp.lt.s32.totalorder %s17_s10, %s17_s10 }
   0x9   :  { %p162_p3 = scmp.ne.s32.totalorder %s17_s10, %s161_s18  ;;  %p167_p5 = scmp.lt.s32.totalorder %s161_s18, %s161_s18 }
   0xb   :  { %p168_p6 = por %p167_p5, %p166_p4 }
   0xd   :  { %p169_p7 = pnand %p168_p6, %p162_p3 }
   0xf   :  { %172 = shalt.err (!%p169_p7)
}
  0x10   :  { %s200_s19 = smov 128   ;;  %s201_s20 = smov 8  }
  0x11   :  { %22 = dma.hbm_to_vmem [thread:$0]  %s250_s1, 256, %s17_s10, [#allocation3], %s200_s19, %s200_s19, %s201_s20  }
  0x12   :  { %195 = dma.done.wait [#allocation3], 256  }
  0x13   :  { %196 = vsyncadd [#allocation3], 4294967040  ;;  %v202_v0 = vmov 0   ;;  %v203_v1 = vmov 0.0|0.0   ;;  %v26_v2 = vld [vmem:[%s249_s0] sm:$0xff]  ;;  %v36_v4 = vld [vmem:[#allocation2 + $0x8] sm:$0xff]  ;;  %v27_v7 = vlaneseq }
  0x14   :  { %150 = vset.pattern.permute.xlu0 %v202_v0  ;;  %139 = vmatprep.subr.bf16.mxu0 %v203_v1  ;;  %v35_v3 = vld [vmem:[#allocation2] sm:$0xff]  ;;  %vm204_vm0 = vmmov 0   ;;  %v205_v6 = vmov 0.0   ;;  %vm37_vm1 = vcmask 130048   ;;  %s206_s1 = smov [#allocation5]  }
  0x15   :  { %30 = vperm.xlu0 %150, %v26_v2   ;;  %v140_v5 = vpack.c.bf16 %v36_v4, %v35_v3  ;;  %136 = vmatprep.mubr.msk.f32.mxu0 %vm204_vm0, %v205_v6  ;;  %v28_v8 = vand.u32 127, %v27_v7  ;;  %s118_s25 = sshll.u32 %s206_s1, 4  ;;  %s119_s25 = int_to_ptr.vmem [resolvable:$true] %s118_s25 }
  0x16   :  { %s173_s0 = scalar_lea.vmem %s119_s25, 128  ;;  %p178_p9 = scmp.lt.s32.totalorder %s119_s25, %s119_s25 }
  0x17   :  { %141 = vmatpush3.bf16.msra.mxu0 %v140_v5  ;;  %p174_p8 = scmp.ne.s32.totalorder %s119_s25, %s173_s0  ;;  %p179_p10 = scmp.lt.s32.totalorder %s173_s0, %s173_s0 }
  0x19   :  { %p180_p11 = por %p179_p10, %p178_p9 }
  0x1b   :  { %p181_p12 = pnand %p180_p11, %p174_p8 }
  0x94   :  { %v31_v9 = vpop.permute.xlu0 %30 }
  0x95   :  { %vm32_vm2 = vcmp.eq.s32.totalorder %v28_v8, %v31_v9 }
  0x96   :  { %v127_v10 = vsel %vm32_vm2, 1.0, %v205_v6 }
  0x97   :  { %137 = vmatmul.mubr.msk.f32.vlgmr.msra.gmra.mrb[0].mxu0 %vm37_vm1, %v127_v10 }
 0x16a   :  { %v107_v11 = vpop.f32.mrb[0].mxu0 }
 0x16b   :  { %111 = vst [vmem:[#allocation5] sm:$0xff] %v107_v11  ;;  %v138_v12 = vpop.f32.mrb[1].mxu0 }
 0x16c   :  { %184 = shalt.err (!%p181_p12)
}
 0x16d   :  { %s185_s28 = scalar_lea.hbm %s251_s2, 128 }
 0x16e   :  { %p186_p13 = scmp.ne.s32.totalorder %s251_s2, %s185_s28  ;;  %p189_p0 = scmp.lt.u32.totalorder %s185_s28, %s251_s2 }
 0x170   :  { %p191_p1 = pnand %p189_p0, %p186_p13 }
 0x172   :  { %194 = shalt.err (!%p191_p1)
}
 0x173   :  { %121 = dma.vmem_to_hbm [thread:$0]  %s119_s25, 128, %s251_s2, [#allocation4]  }
 0x174   :  { %197 = dma.done.wait [#allocation4], 128  }
 0x175   :  { %198 = vsyncadd [#allocation4], 4294967168 }
 0x176   :  { %125 = vsyncpa [#allocation3], 1 }
 0x177   :  { %126 = vsyncpa [#allocation4], 1 }

</bundles_post_ra>
